<compile_context>
chip_gen: v7x
topology: tpu7x:2x2x1
jax: 0.10.0
libtpu: 0.0.40
codegen_flags: <defaults>
</compile_context>

<pallas_src>
import jax
import jax.numpy as jnp
from jax.experimental import pallas as pl
from jax.experimental.pallas import tpu as pltpu


def make_vae_kernel(n_latent: int):
    """Build the VAE forward kernel; n_latent is a static split point."""

    def vae_forward_kernel(
        x_ref,        # [TB, D]   f32 flattened input tile (cast to bf16 in-kernel)
        eps_ref,      # [TB, L]   f32 reparameterization noise tile
        w1_ref,       # [D, H]    bf16 encoder hidden weight
        b1_ref,       # [1, H]    f32
        wh_ref,       # [H, 2L]   bf16 fused (mu || logvar) head weight
        bh_ref,       # [1, 2L]   f32 fused head bias
        w2_ref,       # [L, H]    bf16 decoder hidden weight
        b2_ref,       # [1, H]    f32
        w3_ref,       # [H, D]    bf16 decoder output weight
        b3_ref,       # [1, D]    f32
        out_ref,      # [TB, D]   bf16 reconstruction tile
    ):
        # In-kernel bf16 cast (no extra HBM pass in the wrapper).
        x = x_ref[...].astype(jnp.bfloat16)

        # ----- encoder hidden (bf16 matmul, f32 accumulate) -----
        h1 = jnp.dot(x, w1_ref[...], preferred_element_type=jnp.float32) + b1_ref[...]
        h1 = jnp.maximum(h1, 0.0)

        # ----- fused mu/logvar head: single MXU pass with N = 2*L -----
        head = (
            jnp.dot(h1.astype(jnp.bfloat16), wh_ref[...],
                    preferred_element_type=jnp.float32)
            + bh_ref[...]
        )
        # TODO(synk): lane-aligned (128-col) mu/logvar split would avoid a small
        # XLU rotate here; minor win, XLU slot has slack at these sizes.
        mu = head[:, :n_latent]
        logvar = head[:, n_latent:]

        # ----- reparameterization in f32: z = mu + exp(0.5*logvar) * eps -----
        z = mu + jnp.exp(0.5 * logvar) * eps_ref[...]

        # ----- decoder -----
        h2 = (
            jnp.dot(z.astype(jnp.bfloat16), w2_ref[...],
                    preferred_element_type=jnp.float32)
            + b2_ref[...]
        )
        h2 = jnp.maximum(h2, 0.0)

        logits = (
            jnp.dot(h2.astype(jnp.bfloat16), w3_ref[...],
                    preferred_element_type=jnp.float32)
            + b3_ref[...]
        )
        # f32 sigmoid on the EUP, bf16 writeback (halves output HBM traffic).
        out_ref[...] = jax.nn.sigmoid(logits).astype(out_ref.dtype)

    return vae_forward_kernel


def prepare_params(params):
    """One-time parameter prep, hoisted out of the per-call path:
    fuse mu/logvar heads into one [H, 2L] matrix and cast matmul weights to bf16."""
    return {
        "w1": params["w1"].astype(jnp.bfloat16),
        "b1": params["b1"].astype(jnp.float32),
        "wh": jnp.concatenate([params["wmu"], params["wlv"]], axis=1).astype(jnp.bfloat16),
        "bh": jnp.concatenate([params["bmu"], params["blv"]], axis=1).astype(jnp.float32),
        "w2": params["w2"].astype(jnp.bfloat16),
        "b2": params["b2"].astype(jnp.float32),
        "w3": params["w3"].astype(jnp.bfloat16),
        "b3": params["b3"].astype(jnp.float32),
    }


def _choose_batch_tile(B, requested, *, min_grid_steps=4, align=16):
    """Pick a batch tile that (a) divides B exactly (no padding copy in the
    wrapper), (b) is 16-row aligned for dense bf16 packing unless it equals B,
    and (c) keeps at least `min_grid_steps` grid steps when the batch allows
    (>= 2 per TensorCore on v7x so input prefetch / writeback overlap)."""
    if B <= align:
        return B                     # single full-batch tile (block == full dim is legal)
    cap = max(align, (B // min_grid_steps) // align * align)
    tb = min(requested, cap, B)
    tb = max(align, tb // align * align)
    while tb > align and B % tb != 0:
        tb -= align
    if B % tb != 0:
        return B                     # fall back: one full-batch tile, still no padding
    return tb


def vae_forward(x_nchw, eps, prepped, *, batch_tile=256):
    """x_nchw: [B, C, H, W] float32; eps: [B, L] float32; prepped: prepare_params output.
    Returns the reconstruction in bf16 with the same NCHW shape."""
    B = x_nchw.shape[0]
    D = x_nchw.shape[1] * x_nchw.shape[2] * x_nchw.shape[3]
    HID = prepped["w1"].shape[1]
    L = eps.shape[1]

    x_flat = x_nchw.reshape(B, D)            # f32; no wrapper-side cast or pad
    tb = _choose_batch_tile(B, batch_tile)
    nb = B // tb

    kernel = make_vae_kernel(L)

    # Constant (0,0) block indices -> weights DMA'd once, VMEM-resident across steps.
    in_specs = [
        pl.BlockSpec((tb, D), lambda i: (i, 0)),        # x tile over batch
        pl.BlockSpec((tb, L), lambda i: (i, 0)),        # eps tile over batch
        pl.BlockSpec((D, HID), lambda i: (0, 0)),       # w1
        pl.BlockSpec((1, HID), lambda i: (0, 0)),       # b1
        pl.BlockSpec((HID, 2 * L), lambda i: (0, 0)),   # fused head weight
        pl.BlockSpec((1, 2 * L), lambda i: (0, 0)),     # fused head bias
        pl.BlockSpec((L, HID), lambda i: (0, 0)),       # w2
        pl.BlockSpec((1, HID), lambda i: (0, 0)),       # b2
        pl.BlockSpec((HID, D), lambda i: (0, 0)),       # w3
        pl.BlockSpec((1, D), lambda i: (0, 0)),         # b3
    ]
    out_spec = pl.BlockSpec((tb, D), lambda i: (i, 0))

    # VMEM budget: double-buffered activation tiles + single-copy weights; only
    # raise the scoped limit when the default (16 MiB on v5e) would be exceeded.
    act_bytes = 2 * (tb * D * 4 + tb * L * 4 + tb * D * 2)
    w_bytes = (D * HID + HID * 2 * L + L * HID + HID * D) * 2 \
        + (2 * HID + 2 * L + D) * 4
    need = act_bytes + 2 * w_bytes + (2 << 20)
    vmem_limit = int(min(need * 3 // 2, 64 * 1024 * 1024)) if need > (16 << 20) else None

    # TODO(synk): if D/HID grow beyond toy sizes, add a K-tiling grid axis
    # (reduction axis last, "arbitrary", f32 VMEM accumulator) instead of keeping
    # full [D,H]/[H,D] weights resident.
    recon = pl.pallas_call(
        kernel,
        out_shape=jax.ShapeDtypeStruct((B, D), jnp.bfloat16),
        grid=(nb,),
        in_specs=in_specs,
        out_specs=out_spec,
        compiler_params=pltpu.CompilerParams(
            dimension_semantics=("parallel",),   # batch axis -> both TCs on v7x
            vmem_limit_bytes=vmem_limit,
        ),
    )(x_flat, eps, prepped["w1"], prepped["b1"], prepped["wh"], prepped["bh"],
      prepped["w2"], prepped["b2"], prepped["w3"], prepped["b3"])

    return recon.reshape(x_nchw.shape)


def init_params(key, d_in, d_hidden, n_latent):
    """Deterministic synthetic parameters (Gaussian, scaled)."""
    ks = jax.random.split(key, 6)
    s = 0.05
    return {
        "w1":  s * jax.random.normal(ks[0], (d_in, d_hidden), jnp.float32),
        "b1":  jnp.zeros((1, d_hidden), jnp.float32),
        "wmu": s * jax.random.normal(ks[1], (d_hidden, n_latent), jnp.float32),
        "bmu": jnp.zeros((1, n_latent), jnp.float32),
        "wlv": s * jax.random.normal(ks[2], (d_hidden, n_latent), jnp.float32),
        "blv": jnp.zeros((1, n_latent), jnp.float32),
        "w2":  s * jax.random.normal(ks[3], (n_latent, d_hidden), jnp.float32),
        "b2":  jnp.zeros((1, d_hidden), jnp.float32),
        "w3":  s * jax.random.normal(ks[4], (d_hidden, d_in), jnp.float32),
        "b3":  jnp.zeros((1, d_in), jnp.float32),
    }


if __name__ == "__main__":
    # Image-VAE-like shapes: NCHW = [64, 4, 16, 16] -> D = 1024 flattened features.
    # _choose_batch_tile picks TB=16 here -> a 4-step "parallel" grid with
    # 16-row bf16-packed tiles (>= 2 steps per TensorCore on v7x).
    B, C, H, W = 64, 4, 16, 16
    D = C * H * W
    HID = 32               # encoder/decoder hidden width
    L = 8                  # n_latent

    key = jax.random.PRNGKey(0)
    kx, keps, kp = jax.random.split(key, 3)

    x = jax.random.uniform(kx, (B, C, H, W), jnp.float32)      # pixel-like input
    eps = jax.random.normal(keps, (B, L), jnp.float32)         # reparam noise
    params = init_params(kp, D, HID, L)
    prepped = prepare_params(params)                           # hoisted, one-time prep

    recon = vae_forward(x, eps, prepped, batch_tile=256)
    recon = jax.block_until_ready(recon)

    # Reference in plain JAX mirroring the kernel's bf16-matmul / f32-accumulate math
    # (and the bf16 writeback).
    xf = x.reshape(B, D).astype(jnp.bfloat16)
    h1 = jnp.maximum(
        jnp.dot(xf, prepped["w1"], preferred_element_type=jnp.float32)
        + prepped["b1"], 0.0)
    head = (jnp.dot(h1.astype(jnp.bfloat16), prepped["wh"],
                    preferred_element_type=jnp.float32) + prepped["bh"])
    mu, lv = head[:, :L], head[:, L:]
    z = mu + jnp.exp(0.5 * lv) * eps
    h2 = jnp.maximum(
        jnp.dot(z.astype(jnp.bfloat16), prepped["w2"],
                preferred_element_type=jnp.float32) + prepped["b2"], 0.0)
    ref = jax.nn.sigmoid(
        jnp.dot(h2.astype(jnp.bfloat16), prepped["w3"],
                preferred_element_type=jnp.float32) + prepped["b3"])
    ref = ref.astype(jnp.bfloat16).astype(jnp.float32).reshape(x.shape)

    err = float(jnp.max(jnp.abs(recon.astype(jnp.float32) - ref)))
    assert jnp.allclose(recon.astype(jnp.float32), ref, atol=2e-2, rtol=2e-2), err

    # TODO(synk): `sample(n_samples)` uses torch.randn under no_grad; the sampling-only
    # path is not part of forward() and is left to the host-side wrapper.
    print("KERNEL_OK")
</pallas_src>

<mosaic_0001>
module attributes {stable_mosaic.version = 11 : i64} {
  func.func @vae_forward_kernel(%arg0: i32, %arg1: memref<16x1024xf32, #tpu.memory_space<vmem>>, %arg2: memref<16x8xf32, #tpu.memory_space<vmem>>, %arg3: memref<1024x32xbf16, #tpu.memory_space<vmem>>, %arg4: memref<1x32xf32, #tpu.memory_space<vmem>>, %arg5: memref<32x16xbf16, #tpu.memory_space<vmem>>, %arg6: memref<1x16xf32, #tpu.memory_space<vmem>>, %arg7: memref<8x32xbf16, #tpu.memory_space<vmem>>, %arg8: memref<1x32xf32, #tpu.memory_space<vmem>>, %arg9: memref<32x1024xbf16, #tpu.memory_space<vmem>>, %arg10: memref<1x1024xf32, #tpu.memory_space<vmem>>, %arg11: memref<16x1024xbf16, #tpu.memory_space<vmem>>) attributes {dimension_semantics = [#tpu.dimension_semantics<parallel>], iteration_bounds = array<i64: 4>, scalar_prefetch = 0 : i64, scratch_operands = 0 : i64, tpu.core_type = #tpu.core_type<tc>, window_params = [{transform_indices = @transform_0, window_bounds = array<i64: 16, 1024>}, {transform_indices = @transform_1, window_bounds = array<i64: 16, 8>}, {pipeline_mode = #tpu.pipeline_mode<synchronous>, transform_indices = @transform_2, window_bounds = array<i64: 1024, 32>}, {pipeline_mode = #tpu.pipeline_mode<synchronous>, transform_indices = @transform_3, window_bounds = array<i64: 1, 32>}, {pipeline_mode = #tpu.pipeline_mode<synchronous>, transform_indices = @transform_4, window_bounds = array<i64: 32, 16>}, {pipeline_mode = #tpu.pipeline_mode<synchronous>, transform_indices = @transform_5, window_bounds = array<i64: 1, 16>}, {pipeline_mode = #tpu.pipeline_mode<synchronous>, transform_indices = @transform_6, window_bounds = array<i64: 8, 32>}, {pipeline_mode = #tpu.pipeline_mode<synchronous>, transform_indices = @transform_7, window_bounds = array<i64: 1, 32>}, {pipeline_mode = #tpu.pipeline_mode<synchronous>, transform_indices = @transform_8, window_bounds = array<i64: 32, 1024>}, {pipeline_mode = #tpu.pipeline_mode<synchronous>, transform_indices = @transform_9, window_bounds = array<i64: 1, 1024>}, {transform_indices = @transform_10, window_bounds = array<i64: 16, 1024>}]} {
    %c0 = arith.constant 0 : index
    %c0_0 = arith.constant 0 : index
    %0 = vector.load %arg1[%c0, %c0_0] : memref<16x1024xf32, #tpu.memory_space<vmem>>, vector<16x1024xf32>
    %1 = arith.truncf %0 : vector<16x1024xf32> to vector<16x1024xbf16>
    %c0_1 = arith.constant 0 : index
    %c0_2 = arith.constant 0 : index
    %2 = vector.load %arg3[%c0_1, %c0_2] : memref<1024x32xbf16, #tpu.memory_space<vmem>>, vector<1024x32xbf16>
    %cst = arith.constant dense<0.000000e+00> : vector<16x32xf32>
    %3 = tpu.matmul %1, %2, %cst {dimension_numbers = #tpu.dot_dimension_numbers<[1], [0], [0], [1], [0, 0, 1, 1], [], []>} : vector<16x1024xbf16>, vector<1024x32xbf16>, vector<16x32xf32> -> vector<16x32xf32>
    %c0_3 = arith.constant 0 : index
    %c0_4 = arith.constant 0 : index
    %4 = vector.load %arg4[%c0_3, %c0_4] : memref<1x32xf32, #tpu.memory_space<vmem>>, vector<1x32xf32>
    %5 = vector.broadcast %4 : vector<1x32xf32> to vector<16x32xf32>
    %6 = arith.addf %3, %5 : vector<16x32xf32>
    %cst_5 = arith.constant 0.000000e+00 : f32
    %7 = vector.broadcast %cst_5 : f32 to vector<16x32xf32>
    %8 = arith.maximumf %6, %7 : vector<16x32xf32>
    %9 = arith.truncf %8 : vector<16x32xf32> to vector<16x32xbf16>
    %c0_6 = arith.constant 0 : index
    %c0_7 = arith.constant 0 : index
    %10 = vector.load %arg5[%c0_6, %c0_7] : memref<32x16xbf16, #tpu.memory_space<vmem>>, vector<32x16xbf16>
    %cst_8 = arith.constant dense<0.000000e+00> : vector<16x16xf32>
    %11 = tpu.matmul %9, %10, %cst_8 {dimension_numbers = #tpu.dot_dimension_numbers<[1], [0], [0], [1], [0, 0, 1, 1], [], []>} : vector<16x32xbf16>, vector<32x16xbf16>, vector<16x16xf32> -> vector<16x16xf32>
    %c0_9 = arith.constant 0 : index
    %c0_10 = arith.constant 0 : index
    %12 = vector.load %arg6[%c0_9, %c0_10] : memref<1x16xf32, #tpu.memory_space<vmem>>, vector<1x16xf32>
    %13 = vector.broadcast %12 : vector<1x16xf32> to vector<16x16xf32>
    %14 = arith.addf %11, %13 : vector<16x16xf32>
    %15 = vector.extract_strided_slice %14 {offsets = [0, 0], sizes = [16, 8], strides = [1, 1]} : vector<16x16xf32> to vector<16x8xf32>
    %16 = vector.extract_strided_slice %14 {offsets = [0, 8], sizes = [16, 8], strides = [1, 1]} : vector<16x16xf32> to vector<16x8xf32>
    %cst_11 = arith.constant 5.000000e-01 : f32
    %17 = vector.broadcast %cst_11 : f32 to vector<16x8xf32>
    %18 = arith.mulf %17, %16 : vector<16x8xf32>
    %19 = math.exp %18 : vector<16x8xf32>
    %c0_12 = arith.constant 0 : index
    %c0_13 = arith.constant 0 : index
    %20 = vector.load %arg2[%c0_12, %c0_13] : memref<16x8xf32, #tpu.memory_space<vmem>>, vector<16x8xf32>
    %21 = arith.mulf %19, %20 : vector<16x8xf32>
    %22 = arith.addf %15, %21 : vector<16x8xf32>
    %23 = arith.truncf %22 : vector<16x8xf32> to vector<16x8xbf16>
    %c0_14 = arith.constant 0 : index
    %c0_15 = arith.constant 0 : index
    %24 = vector.load %arg7[%c0_14, %c0_15] : memref<8x32xbf16, #tpu.memory_space<vmem>>, vector<8x32xbf16>
    %cst_16 = arith.constant dense<0.000000e+00> : vector<16x32xf32>
    %25 = tpu.matmul %23, %24, %cst_16 {dimension_numbers = #tpu.dot_dimension_numbers<[1], [0], [0], [1], [0, 0, 1, 1], [], []>} : vector<16x8xbf16>, vector<8x32xbf16>, vector<16x32xf32> -> vector<16x32xf32>
    %c0_17 = arith.constant 0 : index
    %c0_18 = arith.constant 0 : index
    %26 = vector.load %arg8[%c0_17, %c0_18] : memref<1x32xf32, #tpu.memory_space<vmem>>, vector<1x32xf32>
    %27 = vector.broadcast %26 : vector<1x32xf32> to vector<16x32xf32>
    %28 = arith.addf %25, %27 : vector<16x32xf32>
    %cst_19 = arith.constant 0.000000e+00 : f32
    %29 = vector.broadcast %cst_19 : f32 to vector<16x32xf32>
    %30 = arith.maximumf %28, %29 : vector<16x32xf32>
    %31 = arith.truncf %30 : vector<16x32xf32> to vector<16x32xbf16>
    %c0_20 = arith.constant 0 : index
    %c0_21 = arith.constant 0 : index
    %32 = vector.load %arg9[%c0_20, %c0_21] : memref<32x1024xbf16, #tpu.memory_space<vmem>>, vector<32x1024xbf16>
    %cst_22 = arith.constant dense<0.000000e+00> : vector<16x1024xf32>
    %33 = tpu.matmul %31, %32, %cst_22 {dimension_numbers = #tpu.dot_dimension_numbers<[1], [0], [0], [1], [0, 0, 1, 1], [], []>} : vector<16x32xbf16>, vector<32x1024xbf16>, vector<16x1024xf32> -> vector<16x1024xf32>
    %c0_23 = arith.constant 0 : index
    %c0_24 = arith.constant 0 : index
    %34 = vector.load %arg10[%c0_23, %c0_24] : memref<1x1024xf32, #tpu.memory_space<vmem>>, vector<1x1024xf32>
    %35 = vector.broadcast %34 : vector<1x1024xf32> to vector<16x1024xf32>
    %36 = arith.addf %33, %35 : vector<16x1024xf32>
    %37 = arith.negf %36 : vector<16x1024xf32>
    %38 = math.exp %37 : vector<16x1024xf32>
    %cst_25 = arith.constant 1.000000e+00 : f32
    %39 = vector.broadcast %cst_25 : f32 to vector<16x1024xf32>
    %40 = arith.addf %39, %38 : vector<16x1024xf32>
    %41 = arith.divf %39, %40 : vector<16x1024xf32>
    %42 = arith.truncf %41 : vector<16x1024xf32> to vector<16x1024xbf16>
    %c0_26 = arith.constant 0 : index
    %c0_27 = arith.constant 0 : index
    %43 = vector.load %arg11[%c0_26, %c0_27] : memref<16x1024xbf16, #tpu.memory_space<vmem>>, vector<16x1024xbf16>
    tpu.vector_store %arg11[%c0_26, %c0_27], %42 {strides = array<i32>} : memref<16x1024xbf16, #tpu.memory_space<vmem>>, vector<16x1024xbf16>,
    return
  }
  func.func @transform_0(%arg0: i32) -> (i32, i32) {
    %c0_i32 = arith.constant 0 : i32
    %c0_i32_0 = arith.constant 0 : i32
    return %arg0, %c0_i32 : i32, i32
  }
  func.func @transform_1(%arg0: i32) -> (i32, i32) {
    %c0_i32 = arith.constant 0 : i32
    %c0_i32_0 = arith.constant 0 : i32
    return %arg0, %c0_i32 : i32, i32
  }
  func.func @transform_2(%arg0: i32) -> (i32, i32) {
    %c0_i32 = arith.constant 0 : i32
    %c0_i32_0 = arith.constant 0 : i32
    %c0_i32_1 = arith.constant 0 : i32
    return %c0_i32, %c0_i32_0 : i32, i32
  }
  func.func @transform_3(%arg0: i32) -> (i32, i32) {
    %c0_i32 = arith.constant 0 : i32
    %c0_i32_0 = arith.constant 0 : i32
    %c0_i32_1 = arith.constant 0 : i32
    return %c0_i32, %c0_i32_0 : i32, i32
  }
  func.func @transform_4(%arg0: i32) -> (i32, i32) {
    %c0_i32 = arith.constant 0 : i32
    %c0_i32_0 = arith.constant 0 : i32
    %c0_i32_1 = arith.constant 0 : i32
    return %c0_i32, %c0_i32_0 : i32, i32
  }
  func.func @transform_5(%arg0: i32) -> (i32, i32) {
    %c0_i32 = arith.constant 0 : i32
    %c0_i32_0 = arith.constant 0 : i32
    %c0_i32_1 = arith.constant 0 : i32
    return %c0_i32, %c0_i32_0 : i32, i32
  }
  func.func @transform_6(%arg0: i32) -> (i32, i32) {
    %c0_i32 = arith.constant 0 : i32
    %c0_i32_0 = arith.constant 0 : i32
    %c0_i32_1 = arith.constant 0 : i32
    return %c0_i32, %c0_i32_0 : i32, i32
  }
  func.func @transform_7(%arg0: i32) -> (i32, i32) {
    %c0_i32 = arith.constant 0 : i32
    %c0_i32_0 = arith.constant 0 : i32
    %c0_i32_1 = arith.constant 0 : i32
    return %c0_i32, %c0_i32_0 : i32, i32
  }
  func.func @transform_8(%arg0: i32) -> (i32, i32) {
    %c0_i32 = arith.constant 0 : i32
    %c0_i32_0 = arith.constant 0 : i32
    %c0_i32_1 = arith.constant 0 : i32
    return %c0_i32, %c0_i32_0 : i32, i32
  }
  func.func @transform_9(%arg0: i32) -> (i32, i32) {
    %c0_i32 = arith.constant 0 : i32
    %c0_i32_0 = arith.constant 0 : i32
    %c0_i32_1 = arith.constant 0 : i32
    return %c0_i32, %c0_i32_0 : i32, i32
  }
  func.func @transform_10(%arg0: i32) -> (i32, i32) {
    %c0_i32 = arith.constant 0 : i32
    %c0_i32_0 = arith.constant 0 : i32
    return %arg0, %c0_i32 : i32, i32
  }
}

</mosaic_0001>

<bundles_post_ra>
// kernel: tpu_custom_call.1
= control target key start
LH: loop header
LB: loop body
LE: loop exit
PB: predicated region body
PF: predicated region fallthrough
CT: control target
= control target key end

     0   :  { %15 = vsyncpa [#allocation3], 0  ;;  %s2776_s0 = inlined_call_operand.vmem [shape: f32[64,1024], index: 0, kind: input, shape index: {}]   ;;  %s2777_s1 = inlined_call_operand.vmem [shape: f32[64,8], index: 1, kind: input, shape index: {}]   ;;  %s2778_s2 = inlined_call_operand.vmem [shape: bf16[1024,32], index: 2, kind: input, shape index: {}]   ;;  %s2779_s3 = inlined_call_operand.vmem [shape: f32[1,32], index: 3, kind: input, shape index: {}]   ;;  %s2780_s4 = inlined_call_operand.vmem [shape: bf16[32,16], index: 4, kind: input, shape index: {}]   ;;  %s2781_s5 = inlined_call_operand.vmem [shape: f32[1,16], index: 5, kind: input, shape index: {}]   ;;  %s2782_s6 = inlined_call_operand.vmem [shape: bf16[8,32], index: 6, kind: input, shape index: {}]   ;;  %s2783_s7 = inlined_call_operand.vmem [shape: f32[1,32], index: 7, kind: input, shape index: {}]   ;;  %s2784_s8 = inlined_call_operand.vmem [shape: bf16[32,1024], index: 8, kind: input, shape index: {}]   ;;  %s2785_s9 = inlined_call_operand.vmem [shape: f32[1,1024], index: 9, kind: input, shape index: {}]   ;;  %s2786_s10 = inlined_call_operand.hbm [shape: bf16[64,1024], index: 10, kind: output, shape index: {}]  }
   0x1   :  { %17 = vsyncpa [#allocation3 + $0x1], 0  ;;  %s2364_s13 = smov 0   ;;  %s2366_s14 = smov 0  }
   0x2   :  { %s2368_s15 = smov 0   ;;  %s2370_s16 = smov 0  }
   0x3 LB: > { %s2385_s17 = sadd.s32 4294967295, %s2299_s16   ;;  %s1808_s18 = sadd.s32 4294967294, %s2299_s16   ;;  %s2299_s16 = sphi %s2370_s16, %s2794_s16   ;;  %s2295_s15 = sphi %s2368_s15, %s2793_s15   ;;  %s2291_s14 = sphi %s2366_s14, %s2792_s14   ;;  %s2287_s13 = sphi %s2364_s13, %s2791_s13  }
   0x4   : > { %s2389_s19 = sadd.s32 1, %s2299_s16   ;;  %s250_s20 = sadd.s32 1, %s2295_s15 }
   0x5   : > { %s247_s21 = ssub.s32 %s2299_s16, %s2389_s19  ;;  %p260_p0 = scmp.ne.s32.totalorder %s2295_s15, %s2291_s14 }
   0x6   : > { %p248_p1 = scmp.eq.s32.totalorder %s247_s21, 0  ;;  %p261_p2 = scmp.eq.s32.totalorder %s2385_s17, 3 }
   0x7   : > { %p266_p3 = scmp.ne.s32.totalorder %s2291_s14, %s2287_s13  ;;  %p267_p4 = scmp.eq.s32.totalorder %s1808_s18, 3 }
   0x8   : > { %s2400_s22 = scalar_select %p248_p1, %s2295_s15, %s250_s20  }
   0x9   : > { %p2402_p5 = por %p261_p2, %p260_p0  ;;  %p2406_p6 = por %p267_p4, %p266_p3 }
   0xa   : > { %2787 = sst [smem:[#allocation5_spill]] %s2400_s22  ;;  %p1811_p7 = scmp.ge.s32.totalorder %s2299_s16, 1 }
   0xb   : > { %p328_p8 = scmp.lt.s32.totalorder %s2299_s16, 5 }
   0xd   : > { %p329_p9 = pnand %p1811_p7, %p328_p8 }
   0xe   : > { %v2103_v0 = vld [vmem:[%s2778_s2 + $0x40] sm:$0xff] (!%p329_p9)   ;;  %v2107_v4 = vld [vmem:[%s2778_s2 + $0x48] sm:$0xff] (!%p329_p9)   ;;  %v2111_v8 = vld [vmem:[%s2778_s2 + $0x50] sm:$0xff] (!%p329_p9)   ;;  %s1813_s21 = sshll.u32 (!%p329_p9), %s2385_s17, 1  ;;  %vm2302_vm0 = vmmov (!%p329_p9), 0   ;;  %vm1120_vm1 = vcmask (!%p329_p9), 261120  }
   0xf   : > { %332 = sbr.rel (%p329_p9) target bundleno = 1163 (0x48b), region = 60  ;;  %v2104_v1 = vld [vmem:[%s2778_s2 + $0xc0] sm:$0xff] (!%p329_p9)   ;;  %1950 = vmatprep.subr.bf16.mxu0 (!%p329_p9), %v2103_v0  ;;  %v2108_v5 = vld [vmem:[%s2778_s2 + $0xc8] sm:$0xff] (!%p329_p9)   ;;  %v2112_v9 = vld [vmem:[%s2778_s2 + $0xd0] sm:$0xff] (!%p329_p9)   ;;  %p373_p10 = scmp.lt.s32.totalorder (!%p329_p9), %s1813_s21, 7  ;;  %vm1206_vm2 = vcmask (!%p329_p9), 1043456  }
  0x10   : > { %v2105_v2 = vld [vmem:[%s2778_s2] sm:$0xff] (!%p329_p9)   ;;  %1972 = vmatprep.subr.bf16.mxu1 (!%p329_p9), %v2104_v1  ;;  %v2109_v6 = vld [vmem:[%s2778_s2 + $0x8] sm:$0xff] (!%p329_p9)   ;;  %v2113_v10 = vld [vmem:[%s2778_s2 + $0x10] sm:$0xff] (!%p329_p9)   ;;  %s2304_s28 = smov (!%p329_p9), 120   ;;  %vm1202_vm3 = vcmask (!%p329_p9), 64512   ;;  %s2306_s20 = smov (!%p329_p9), [#allocation2]  }
  0x11   : > { %v2106_v3 = vld [vmem:[%s2778_s2 + $0x80] sm:$0xff] (!%p329_p9)   ;;  %1951 = vmatpush3.bf16.msra.mxu0 (!%p329_p9), %v2105_v2  ;;  %v2110_v7 = vld [vmem:[%s2778_s2 + $0x88] sm:$0xff] (!%p329_p9)   ;;  %v2114_v11 = vld [vmem:[%s2778_s2 + $0x90] sm:$0xff] (!%p329_p9)   ;;  %s2241_s26 = sshll.u32 (!%p329_p9), %s2306_s20, 4  ;;  %s2242_s26 = int_to_ptr.vmem [resolvable:$false] %s2241_s26 }
  0x12   : > { %1973 = vmatpush3.bf16.msra.mxu1 (!%p329_p9), %v2106_v3  ;;  %1952 = vmatprep.subr.bf16.mxu0 (!%p329_p9), %v2107_v4  ;;  %v2115_v12 = vld [vmem:[%s2778_s2 + $0x58] sm:$0xff] (!%p329_p9)   ;;  %v2119_v16 = vld [vmem:[%s2778_s2 + $0x60] sm:$0xff] (!%p329_p9)   ;;  %v2123_v20 = vld [vmem:[%s2778_s2 + $0x68] sm:$0xff] (!%p329_p9)  }
  0x13   : > { %1974 = vmatprep.subr.bf16.mxu1 (!%p329_p9), %v2108_v5  ;;  %v2116_v13 = vld [vmem:[%s2778_s2 + $0xd8] sm:$0xff] (!%p329_p9)   ;;  %v2120_v17 = vld [vmem:[%s2778_s2 + $0xe0] sm:$0xff] (!%p329_p9)   ;;  %v2124_v21 = vld [vmem:[%s2778_s2 + $0xe8] sm:$0xff] (!%p329_p9)  }
  0x14   : > { %v2117_v14 = vld [vmem:[%s2778_s2 + $0x18] sm:$0xff] (!%p329_p9)   ;;  %v2121_v18 = vld [vmem:[%s2778_s2 + $0x20] sm:$0xff] (!%p329_p9)   ;;  %v2125_v22 = vld [vmem:[%s2778_s2 + $0x28] sm:$0xff] (!%p329_p9)  }
  0x15   : > { %1953 = vmatpush3.bf16.msra.mxu0 (!%p329_p9), %v2109_v6  ;;  %v2118_v15 = vld [vmem:[%s2778_s2 + $0x98] sm:$0xff] (!%p329_p9)   ;;  %v2122_v19 = vld [vmem:[%s2778_s2 + $0xa0] sm:$0xff] (!%p329_p9)   ;;  %v2126_v23 = vld [vmem:[%s2778_s2 + $0xa8] sm:$0xff] (!%p329_p9)  }
  0x16   : > { %1975 = vmatpush3.bf16.msra.mxu1 %v2110_v7  ;;  %1954 = vmatprep.subr.bf16.mxu0 %v2111_v8  ;;  %s2796_s21 = smov (!%p373_p10, %s1813_s21), 7  ;;  %v2127_v24 = vld [vmem:[%s2778_s2 + $0x70] sm:$0xff]   ;;  %v2131_v28 = vld [vmem:[%s2778_s2 + $0x78] sm:$0xff]   ;;  %v2135_v44 = vld [vmem:[%s2778_s2 + $0x140] sm:$0xff]  }
  0x17   : > { %1976 = vmatprep.subr.bf16.mxu1 %v2112_v9  ;;  %v2128_v25 = vld [vmem:[%s2778_s2 + $0xf0] sm:$0xff]   ;;  %s1939_s27 = sshll.u32 %s2796_s21, 6  ;;  %v2132_v29 = vld [vmem:[%s2778_s2 + $0xf8] sm:$0xff]   ;;  %v2136_v45 = vld [vmem:[%s2778_s2 + $0x1c0] sm:$0xff]  }
  0x18   : > { %v2129_v26 = vld [vmem:[%s2778_s2 + $0x30] sm:$0xff]   ;;  %s2509_s25 = scalar_lea.vmem %s2776_s0, %s1939_s27  ;;  %v2133_v30 = vld [vmem:[%s2778_s2 + $0x38] sm:$0xff]   ;;  %v2137_v46 = vld [vmem:[%s2778_s2 + $0x100] sm:$0xff]   ;;  %s2303_s27 = smov 8  }
  0x19   : > { %1955 = vmatpush3.bf16.msra.mxu0 %v2113_v10  ;;  %v2130_v27 = vld [vmem:[%s2778_s2 + $0xb0] sm:$0xff]   ;;  %v2134_v31 = vld [vmem:[%s2778_s2 + $0xb8] sm:$0xff]   ;;  %v388_v32 = vld [vmem:[%s2509_s25 + $0x8] sm:$0xff] }
  0x1a   : > { %1977 = vmatpush3.bf16.msra.mxu1 %v2114_v11  ;;  %1956 = vmatprep.subr.bf16.mxu0 %v2115_v12  ;;  %v396_v33 = vld [vmem:[%s2509_s25 + $0x48] sm:$0xff]  ;;  %v390_v34 = vld [vmem:[%s2509_s25 + $0x18] sm:$0xff]  ;;  %v387_v37 = vld [vmem:[%s2509_s25] sm:$0xff] }
  0x1b   : > { %1978 = vmatprep.subr.bf16.mxu1 %v2116_v13  ;;  %v404_v35 = vpack.c.bf16 %v396_v33, %v388_v32  ;;  %v398_v36 = vld [vmem:[%s2509_s25 + $0x58] sm:$0xff]  ;;  %v395_v38 = vld [vmem:[%s2509_s25 + $0x40] sm:$0xff]  ;;  %v389_v41 = vld [vmem:[%s2509_s25 + $0x10] sm:$0xff] }
  0x1c   : > { %v406_v39 = vpack.c.bf16 %v398_v36, %v390_v34  ;;  %v403_v40 = vpack.c.bf16 %v395_v38, %v387_v37  ;;  %v397_v42 = vld [vmem:[%s2509_s25 + $0x50] sm:$0xff]  ;;  %v2138_v47 = vld [vmem:[%s2778_s2 + $0x180] sm:$0xff]   ;;  %v2139_v48 = vld [vmem:[%s2778_s2 + $0x148] sm:$0xff]  }
  0x1d   : > { %1957 = vmatpush3.bf16.msra.mxu0 %v2117_v14  ;;  %962 = vmatprep.mubr.bf16.mxu0 %v404_v35  ;;  %v405_v43 = vpack.c.bf16 %v397_v42, %v389_v41  ;;  %v2140_v49 = vld [vmem:[%s2778_s2 + $0x1c8] sm:$0xff]   ;;  %v2143_v52 = vld [vmem:[%s2778_s2 + $0x150] sm:$0xff]   ;;  %v2147_v56 = vld [vmem:[%s2778_s2 + $0x158] sm:$0xff]  }
  0x1e   : > { %1979 = vmatpush3.bf16.msra.mxu1 %v2118_v15  ;;  %1958 = vmatprep.subr.bf16.mxu0 %v2119_v16  ;;  %v2141_v50 = vld [vmem:[%s2778_s2 + $0x108] sm:$0xff]   ;;  %v2144_v53 = vld [vmem:[%s2778_s2 + $0x1d0] sm:$0xff]   ;;  %v2148_v57 = vld [vmem:[%s2778_s2 + $0x1d8] sm:$0xff]  }
  0x1f   : > { %1980 = vmatprep.subr.bf16.mxu1 %v2120_v17  ;;  %1003 = vmatprep.mubr.bf16.mxu1 %v406_v39  ;;  %v2142_v51 = vld [vmem:[%s2778_s2 + $0x188] sm:$0xff]   ;;  %v2145_v54 = vld [vmem:[%s2778_s2 + $0x110] sm:$0xff]   ;;  %v2149_v58 = vld [vmem:[%s2778_s2 + $0x118] sm:$0xff]  }
  0x20   : > { %v2146_v55 = vld [vmem:[%s2778_s2 + $0x190] sm:$0xff]   ;;  %v2150_v59 = vld [vmem:[%s2778_s2 + $0x198] sm:$0xff]   ;;  %v2151_v60 = vld [vmem:[%s2778_s2 + $0x160] sm:$0xff]  }
  0x21   : > { %1959 = vmatpush3.bf16.msra.mxu0 %v2121_v18  ;;  %v2152_v61 = vld [vmem:[%s2778_s2 + $0x1e0] sm:$0xff]   ;;  %v2155_v0 = vld [vmem:[%s2778_s2 + $0x168] sm:$0xff]   ;;  %v2159_v4 = vld [vmem:[%s2778_s2 + $0x170] sm:$0xff]  }
  0x22   : > { %1981 = vmatpush3.bf16.msra.mxu1 %v2122_v19  ;;  %1960 = vmatprep.subr.bf16.mxu0 %v2123_v20  ;;  %v2153_v62 = vld [vmem:[%s2778_s2 + $0x120] sm:$0xff]   ;;  %v2156_v1 = vld [vmem:[%s2778_s2 + $0x1e8] sm:$0xff]   ;;  %v2160_v5 = vld [vmem:[%s2778_s2 + $0x1f0] sm:$0xff]  }
  0x23   : > { %1982 = vmatprep.subr.bf16.mxu1 %v2124_v21  ;;  %v2154_v63 = vld [vmem:[%s2778_s2 + $0x1a0] sm:$0xff]   ;;  %v2157_v2 = vld [vmem:[%s2778_s2 + $0x128] sm:$0xff]   ;;  %v2161_v6 = vld [vmem:[%s2778_s2 + $0x130] sm:$0xff]  }
  0x24   : > { %v2158_v3 = vld [vmem:[%s2778_s2 + $0x1a8] sm:$0xff]   ;;  %v2162_v7 = vld [vmem:[%s2778_s2 + $0x1b0] sm:$0xff]   ;;  %v2163_v8 = vld [vmem:[%s2778_s2 + $0x178] sm:$0xff]  }
  0x25   : > { %1961 = vmatpush3.bf16.msra.mxu0 %v2125_v22  ;;  %v2164_v9 = vld [vmem:[%s2778_s2 + $0x1f8] sm:$0xff]   ;;  %v392_v12 = vld [vmem:[%s2509_s25 + $0x28] sm:$0xff]  ;;  %v391_v18 = vld [vmem:[%s2509_s25 + $0x20] sm:$0xff] }
  0x26   : > { %1983 = vmatpush3.bf16.msra.mxu1 %v2126_v23  ;;  %1962 = vmatprep.subr.bf16.mxu0 %v2127_v24  ;;  %v2165_v10 = vld [vmem:[%s2778_s2 + $0x138] sm:$0xff]   ;;  %v400_v13 = vld [vmem:[%s2509_s25 + $0x68] sm:$0xff]  ;;  %v399_v19 = vld [vmem:[%s2509_s25 + $0x60] sm:$0xff] }
  0x27   : > { %1984 = vmatprep.subr.bf16.mxu1 %v2128_v25  ;;  %v2166_v11 = vld [vmem:[%s2778_s2 + $0x1b8] sm:$0xff]   ;;  %v408_v16 = vpack.c.bf16 %v400_v13, %v392_v12  ;;  %v393_v20 = vld [vmem:[%s2509_s25 + $0x30] sm:$0xff]  ;;  %v407_v21 = vpack.c.bf16 %v399_v19, %v391_v18  ;;  %v2167_v24 = vld [vmem:[%s2780_s4] sm:$0xff]   ;;  %v2301_v25 = vmov 0.0  }
  0x28   : > { %v394_v14 = vld [vmem:[%s2509_s25 + $0x38] sm:$0xff]  ;;  %v401_v22 = vld [vmem:[%s2509_s25 + $0x70] sm:$0xff]  ;;  %v1194_v12 = vld [vmem:[%s2782_s6] sm:$0xf] }
  0x29   : > { %1963 = vmatpush3.bf16.msra.mxu0 %v2129_v26  ;;  %v402_v15 = vld [vmem:[%s2509_s25 + $0x78] sm:$0xff]  ;;  %v409_v23 = vpack.c.bf16 %v401_v22, %v393_v20  ;;  %v2168_v26 = vld [vmem:[%s2780_s4 + $0x8] sm:$0xff]   ;;  %s1817_s25 = sshll.u32 %s2796_s21, 3  ;;  %v1208_v13 = vsel %vm1206_vm2, %v1194_v12, 0 }
  0x2a   : > { %1985 = vmatpush3.bf16.msra.mxu1 %v2130_v27  ;;  %1964 = vmatprep.subr.bf16.mxu0 %v2131_v28  ;;  %v410_v17 = vpack.c.bf16 %v402_v15, %v394_v14  ;;  %s383_s22 = scalar_lea.vmem %s2777_s1, %s1817_s25  ;;  %s369_s25 = sand.u32 1, %s2291_s14  }
  0x2b   : > { %1986 = vmatprep.subr.bf16.mxu1 %v2132_v29  ;;  %v1171_v27 = vld [vmem:[%s383_s22] sm:$0xff]  ;;  %v1172_v28 = vld [vmem:[%s383_s22 + $0x8] sm:$0xff]  ;;  %s1812_s29 = sshll.u32 %s369_s25, 6  ;;  %s1949_s22 = sshll.u32 %s2385_s17, 10 }
  0x2c   : > { %1175 = vrot.lane.b32.xlu0 %v1171_v27, %s2303_s27  ;;  %v1255_v27 = vld [vmem:[%s2784_s8 + $0x8] sm:$0xff]  ;;  %s2714_s30 = scalar_lea.vmem [#allocation2], %s1812_s29  ;;  %s2727_s21 = scalar_lea.hbm %s2786_s10, %s1949_s22 }
  0x2d   : > { %1965 = vmatpush3.bf16.msra.mxu0 %v2133_v30  ;;  %s2735_s17 = scalar_lea.sflag [#allocation3], %s369_s25 }
  0x2e   : > { %1987 = vmatpush3.bf16.msra.mxu1 %v2134_v31  ;;  %1994 = vmatprep.subr.bf16.mxu0 %v2135_v44  ;;  %v1818_v31 = vld [vmem:[%s2779_s3] ss:$0 sm:$0xff] }
  0x2f   : > { %2016 = vmatprep.subr.bf16.mxu1 %v2136_v45 }
  0x30   : > { %963 = vmatmul.mubr.bf16.vlgmr.msra.gmra.mrb[0].mxu0 %v403_v40  ;;  %1177 = vrot.lane.b32.xlu0 %v1172_v28, %s2303_s27  ;;  %s1734_s27 = sshll.u32 %s2714_s30, 4  ;;  %s2729_s27 = int_to_ptr.vmem [resolvable:$true] %s1734_s27 }
  0x31   : > { %1004 = vmatmul.mubr.bf16.vlgmr.msra.gmra.mrb[0].mxu1 %v405_v43  ;;  %1995 = vmatpush3.bf16.msra.mxu0 %v2137_v46  ;;  %s2237_s18 = scalar_lea.vmem %s2729_s27, 1024  ;;  %p2244_p0 = scmp.lt.s32.totalorder %s2729_s27, %s2242_s26 }
  0x32   : > { %2017 = vmatpush3.bf16.msra.mxu1 %v2138_v47  ;;  %1996 = vmatprep.subr.bf16.mxu0 %v2139_v48  ;;  %p2238_p11 = scmp.ne.s32.totalorder %s2729_s27, %s2237_s18 }
  0x33   : > { %2018 = vmatprep.subr.bf16.mxu1 %v2140_v49  ;;  %1044 = vmatprep.mubr.bf16.mxu0 %v408_v16 }
  0x34   : > { %1085 = vmatprep.mubr.bf16.mxu1 %v410_v17  ;;  %p2239_p12 = pnand %p2238_p11, %p2402_p5 }
  0x35   : > { %1997 = vmatpush3.bf16.msra.mxu0 %v2141_v50 }
  0x36   : > { %2019 = vmatpush3.bf16.msra.mxu1 %v2142_v51  ;;  %1998 = vmatprep.subr.bf16.mxu0 %v2143_v52  ;;  %p2240_p13 = pneg %p2239_p12 }
  0x37   : > { %2020 = vmatprep.subr.bf16.mxu1 %v2144_v53 }
  0x39   : > { %1999 = vmatpush3.bf16.msra.mxu0 %v2145_v54 }
  0x3a   : > { %2021 = vmatpush3.bf16.msra.mxu1 %v2146_v55  ;;  %2000 = vmatprep.subr.bf16.mxu0 %v2147_v56 }
  0x3b   : > { %2022 = vmatprep.subr.bf16.mxu1 %v2148_v57 }
  0x3d   : > { %2001 = vmatpush3.bf16.msra.mxu0 %v2149_v58 }
  0x3e   : > { %2023 = vmatpush3.bf16.msra.mxu1 %v2150_v59  ;;  %2002 = vmatprep.subr.bf16.mxu0 %v2151_v60 }
  0x3f   : > { %2024 = vmatprep.subr.bf16.mxu1 %v2152_v61 }
  0x41   : > { %2003 = vmatpush3.bf16.msra.mxu0 %v2153_v62 }
  0x42   : > { %2025 = vmatpush3.bf16.msra.mxu1 %v2154_v63  ;;  %2004 = vmatprep.subr.bf16.mxu0 %v2155_v0 }
  0x43   : > { %2026 = vmatprep.subr.bf16.mxu1 %v2156_v1  ;;  %v1883_v1 = vld [vmem:[%s2781_s5] ss:$0 sm:$0xff] }
  0x45   : > { %2005 = vmatpush3.bf16.msra.mxu0 %v2157_v2 }
  0x46   : > { %2027 = vmatpush3.bf16.msra.mxu1 %v2158_v3  ;;  %2006 = vmatprep.subr.bf16.mxu0 %v2159_v4 }
  0x47   : > { %2028 = vmatprep.subr.bf16.mxu1 %v2160_v5 }
  0x49   : > { %2007 = vmatpush3.bf16.msra.mxu0 %v2161_v6 }
  0x4a   : > { %2029 = vmatpush3.bf16.msra.mxu1 %v2162_v7  ;;  %2008 = vmatprep.subr.bf16.mxu0 %v2163_v8 }
  0x4b   : > { %2030 = vmatprep.subr.bf16.mxu1 %v2164_v9 }
  0x4d   : > { %2009 = vmatpush3.bf16.msra.mxu0 %v2165_v10 }
  0x4e   : > { %2031 = vmatpush3.bf16.msra.mxu1 %v2166_v11  ;;  %2043 = vmatprep.subr.bf16.mxu0 %v2301_v25 }
  0x4f   : > { %2051 = vmatprep.subr.bf16.mxu1 %v2301_v25 }
  0x50   : > { %1045 = vmatmul.mubr.bf16.vlgmr.msra.gmra.mrb[4].mxu0 %v407_v21 }
  0x51   : > { %1086 = vmatmul.mubr.bf16.vlgmr.msra.gmra.mrb[4].mxu1 %v409_v23  ;;  %2044 = vmatpush3.bf16.msra.mxu0 %v2167_v24 }
  0x52   : > { %2045 = vmatprep.subr.bf16.mxu0 %v2301_v25  ;;  %2047 = vmatprep.mubr.msk.bf16.mxu0 %vm2302_vm0, %v2301_v25 }
  0x53   : > { %2053 = vmatprep.mubr.msk.bf16.mxu1 %vm2302_vm0, %v2301_v25  ;;  %2052 = vmatpush3.bf16.msra.mxu1 %v1208_v13  ;;  %v1254_v25 = vld [vmem:[%s2784_s8] sm:$0xff] }
  0x55   : > { %2046 = vmatpush3.bf16.msra.mxu0 %v2168_v26  ;;  %v1258_v26 = vld [vmem:[%s2784_s8 + $0x20] sm:$0xff] }
  0x56   : > { %v1890_v28 = vcombine.high %v1254_v25, %v1258_v26 }
  0x58   : > { %1395 = vmatprep.subr.bf16.mxu0 %v1890_v28 }
  0x9e   : > { %v1176_v14 = vpop.permute.xlu0 %1175 }
  0xa2   : > { %v1178_v18 = vpop.permute.xlu0 %1177 }
 0x103   : > { %v1966_v29 = vpop.f32.mrb[0].mxu0 }
 0x104   : > { %v1988_v30 = vpop.f32.mrb[0].mxu1  ;;  %v1967_v32 = vpop.f32.mrb[1].mxu0 }
 0x105   : > { %v1968_v33 = vadd.f32 %v1967_v32, %v1966_v29  ;;  %v1989_v34 = vpop.f32.mrb[1].mxu1  ;;  %v1969_v35 = vpop.f32.mrb[2].mxu0  ;;  %v1259_v29 = vld [vmem:[%s2784_s8 + $0x28] sm:$0xff] }
 0x106   : > { %v1990_v36 = vadd.f32 %v1989_v34, %v1988_v30  ;;  %v1991_v37 = vpop.f32.mrb[2].mxu1  ;;  %v1970_v38 = vpop.f32.mrb[3].mxu0  ;;  %v1889_v30 = vcombine.low %v1254_v25, %v1258_v26  ;;  %v1892_v32 = vcombine.high %v1255_v27, %v1259_v29  ;;  %v1266_v34 = vld [vmem:[%s2784_s8 + $0x60] sm:$0xff] }
 0x107   : > { %v965_v39 = vadd.f32 %v1968_v33, %v1818_v31  ;;  %v1971_v40 = vadd.f32 %v1970_v38, %v1969_v35  ;;  %v1992_v41 = vpop.f32.mrb[3].mxu1  ;;  %v1262_v33 = vld [vmem:[%s2784_s8 + $0x40] sm:$0xff]  ;;  %v1263_v35 = vld [vmem:[%s2784_s8 + $0x48] sm:$0xff] }
 0x108   : > { %v1993_v42 = vadd.f32 %v1992_v41, %v1991_v37  ;;  %1438 = vmatprep.subr.bf16.mxu1 %v1892_v32  ;;  %v1267_v37 = vld [vmem:[%s2784_s8 + $0x68] sm:$0xff]  ;;  %v1897_v38 = vcombine.low %v1262_v33, %v1266_v34  ;;  %v1256_v41 = vld [vmem:[%s2784_s8 + $0x10] sm:$0xff] }
 0x109   : > { %v1006_v43 = vadd.f32 %v1990_v36, %v965_v39  ;;  %v968_v44 = vadd.f32 %v1971_v40, %v1818_v31  ;;  %v1891_v31 = vcombine.low %v1255_v27, %v1259_v29  ;;  %v1898_v36 = vcombine.high %v1262_v33, %v1266_v34 }
 0x10a   : > { %v1899_v39 = vcombine.low %v1263_v35, %v1267_v37  ;;  %v1900_v40 = vcombine.high %v1263_v35, %v1267_v37 }
 0x10b   : > { %v1009_v45 = vadd.f32 %v1993_v42, %v968_v44  ;;  %v1260_v42 = vld [vmem:[%s2784_s8 + $0x30] sm:$0xff]  ;;  %v2305_v44 = vmov 0  }
 0x123   : > { %v2010_v46 = vpop.f32.mrb[4].mxu0 }
 0x124   : > { %v2032_v47 = vpop.f32.mrb[4].mxu1  ;;  %v2011_v48 = vpop.f32.mrb[5].mxu0 }
 0x125   : > { %v2012_v49 = vadd.f32 %v2011_v48, %v2010_v46  ;;  %v2033_v50 = vpop.f32.mrb[5].mxu1  ;;  %v2013_v51 = vpop.f32.mrb[6].mxu0  ;;  %v1894_v46 = vcombine.high %v1256_v41, %v1260_v42 }
 0x126   : > { %v2034_v52 = vadd.f32 %v2033_v50, %v2032_v47  ;;  %v2035_v53 = vpop.f32.mrb[6].mxu1  ;;  %v2014_v54 = vpop.f32.mrb[7].mxu0  ;;  %v1261_v47 = vld [vmem:[%s2784_s8 + $0x38] sm:$0xff]  ;;  %v1887_v50 = vld [vmem:[%s2783_s7] ss:$0 sm:$0xff] }
 0x127   : > { %v1047_v55 = vadd.f32 %v2012_v49, %v1006_v43  ;;  %v2015_v56 = vadd.f32 %v2014_v54, %v2013_v51  ;;  %v2036_v57 = vpop.f32.mrb[7].mxu1  ;;  %v1257_v43 = vld [vmem:[%s2784_s8 + $0x18] sm:$0xff] }
 0x128   : > { %v2037_v58 = vadd.f32 %v2036_v57, %v2035_v53  ;;  %v1895_v48 = vcombine.low %v1257_v43, %v1261_v47  ;;  %v1896_v49 = vcombine.high %v1257_v43, %v1261_v47  ;;  %v1264_v57 = vld [vmem:[%s2784_s8 + $0x50] sm:$0xff] }
 0x129   : > { %v1088_v59 = vadd.f32 %v2034_v52, %v1047_v55  ;;  %v1050_v60 = vadd.f32 %v2015_v56, %v1009_v45  ;;  %v1893_v45 = vcombine.low %v1256_v41, %v1260_v42 }
 0x12b   : > { %v1091_v61 = vadd.f32 %v2037_v58, %v1050_v60  ;;  %v1094_v62 = vmax.f32 %v1088_v59, 0.0  ;;  %v1268_v58 = vld [vmem:[%s2784_s8 + $0x70] sm:$0xff]  ;;  %v1265_v59 = vld [vmem:[%s2784_s8 + $0x58] sm:$0xff] }
 0x12c   : > { %v1269_v60 = vld [vmem:[%s2784_s8 + $0x78] sm:$0xff] }
 0x12d   : > { %v1095_v63 = vmax.f32 %v1091_v61, 0.0 }
 0x12f   : > { %v1096_v0 = vpack.c.bf16 %v1095_v63, %v1094_v62 }
 0x131   : > { %2048 = vmatmul.mubr.msk.bf16.vlgmr.msra.gmra.mrb[8].mxu0 %vm1120_vm1, %v1096_v0  ;;  %v1902_v0 = vcombine.high %v1264_v57, %v1268_v58 }
 0x132   : > { %1396 = vmatpush1.bf16.msra.mxu0 %v1889_v30  ;;  %1427 = vmatprep.mubr.bf16.mxu0 %v2305_v44 }
 0x133   : > { %1397 = vmatprep.subr.bf16.mxu0 %v1898_v36 }
 0x136   : > { %1398 = vmatpush1.bf16.msra.mxu0 %v1897_v38 }
 0x137   : > { %1481 = vmatprep.subr.bf16.mxu0 %v1894_v46 }
 0x204   : > { %v1158_v2 = vpop.f32.mrb[8].mxu0 }
 0x205   : > { %v1159_v3 = vadd.f32 %v1883_v1, %v1158_v2  ;;  %v2049_v4 = vpop.f32.mrb[9].mxu0  ;;  %v1901_v2 = vcombine.low %v1264_v57, %v1268_v58 }
 0x206   : > { %v1161_v5 = vpop.f32.mrb[10].mxu0  ;;  %v1272_v4 = vlaneseq }
 0x207   : > { %v1165_v6 = vmul.f32 0.5, %v1159_v3  ;;  %v1162_v7 = vadd.f32 %v1883_v1, %v1161_v5  ;;  %v2050_v8 = vpop.f32.mrb[11].mxu0  ;;  %v1904_v1 = vcombine.high %v1265_v59, %v1269_v60 }
 0x208   : > { %v1273_v5 = vshrl.u32 %v1272_v4, 7  ;;  %v1270_v8 = vld [vmem:[%s2785_s9] sm:$0xff] }
 0x209   : > { %v1167_v9 = vmul.f32 1.442695, %v1165_v6  ;;  %v1166_v10 = vmul.f32 0.5, %v1162_v7 }
 0x20a   : > { %v1274_v6 = vsub.s32 0, %v1273_v5  ;;  %v1294_v27 = vsub.s32 5, %v1273_v5  ;;  %v1302_v28 = vsub.s32 7, %v1273_v5 }
 0x20b   : > { %2169 = vpow2.f32 %v1167_v9  ;;  %v1169_v11 = vmul.f32 1.442695, %v1166_v10  ;;  %v1278_v9 = vsub.s32 1, %v1273_v5  ;;  %v1286_v10 = vsub.s32 3, %v1273_v5 }
 0x20c   : > { %v1295_v43 = vrot.slane %v1270_v8, %v1294_v27 }
 0x20d   : > { %2171 = vpow2.f32 %v1169_v11  ;;  %v1275_v11 = vrot.slane %v1270_v8, %v1274_v6  ;;  %v1279_v13 = vrot.slane %v1270_v8, %v1278_v9 }
 0x215   : > { %v2170_v15 = vpop.eup %2169 }
 0x216   : > { %v1181_v16 = vmul.f32 %v2170_v15, %v1176_v14  ;;  %v1287_v14 = vrot.slane %v1270_v8, %v1286_v10 }
 0x217   : > { %v2172_v17 = vpop.eup %2171 }
 0x218   : > { %1185 = vrot.lane.b32.xlu1 %v1181_v16, %s2304_s28  ;;  %v1182_v19 = vmul.f32 %v2172_v17, %v1178_v18 }
 0x21c   : > { %1187 = vrot.lane.b32.xlu1 %v1182_v19, %s2304_s28  ;;  %s2243_s28 = scalar_lea.vmem %s2242_s26, 2048 }
 0x21d   : > { %p2245_p1 = scmp.lt.s32.totalorder %s2243_s28, %s2237_s18 }
 0x21f   : > { %p2246_p2 = por %p2245_p1, %p2244_p0 }
 0x221   : > { %p2247_p3 = pnand %p2246_p2, %p2240_p13 }
 0x28a   : > { %v1186_v20 = vpop.permute.xlu1 %1185 }
 0x28b   : > { %v1191_v22 = vadd.f32 %v1186_v20, %v1159_v3  ;;  %v1903_v3 = vcombine.low %v1265_v59, %v1269_v60 }
 0x28e   : > { %v1188_v21 = vpop.permute.xlu1 %1187 }
 0x28f   : > { %v1192_v23 = vadd.f32 %v1188_v21, %v1162_v7  ;;  %v1282_v7 = vsub.s32 2, %v1273_v5  ;;  %v1290_v21 = vsub.s32 4, %v1273_v5 }
 0x291   : > { %v1193_v24 = vpack.c.bf16 %v1192_v23, %v1191_v22  ;;  %v1283_v12 = vrot.slane %v1270_v8, %v1282_v7  ;;  %v1298_v22 = vsub.s32 6, %v1273_v5 }
 0x293   : > { %2054 = vmatmul.mubr.msk.bf16.vlgmr.msra.gmra.mrb[8].mxu1 %vm1202_vm3, %v1193_v24  ;;  %v1299_v41 = vrot.slane %v1270_v8, %v1298_v22 }
 0x294   : > { %1439 = vmatpush1.bf16.msra.mxu1 %v1891_v31  ;;  %1470 = vmatprep.mubr.bf16.mxu1 %v2305_v44 }
 0x295   : > { %1440 = vmatprep.subr.bf16.mxu1 %v1900_v40  ;;  %v1291_v40 = vrot.slane %v1270_v8, %v1290_v21 }
 0x298   : > { %1441 = vmatpush1.bf16.msra.mxu1 %v1899_v39 }
 0x299   : > { %1524 = vmatprep.subr.bf16.mxu1 %v1896_v49 }
 0x366   : > { %v1244_v51 = vpop.f32.mrb[8].mxu1 }
 0x367   : > { %v1245_v52 = vadd.f32 %v1887_v50, %v1244_v51  ;;  %v2055_v53 = vpop.f32.mrb[9].mxu1 }
 0x368   : > { %v1247_v54 = vpop.f32.mrb[10].mxu1 }
 0x369   : > { %v1248_v55 = vadd.f32 %v1887_v50, %v1247_v54  ;;  %v2056_v56 = vpop.f32.mrb[11].mxu1  ;;  %v1251_v61 = vmax.f32 %v1245_v52, 0.0 }
 0x36b   : > { %v1252_v62 = vmax.f32 %v1248_v55, 0.0 }
 0x36d   : > { %v1253_v63 = vpack.c.bf16 %v1252_v62, %v1251_v61 }
 0x36f   : > { %1905 = vmatmul.mubr.msk.bf16.vlgmr.msra.gmra.mrb[12].mxu0 %vm1120_vm1, %v1253_v63  ;;  %1906 = vmatmul.mubr.msk.bf16.vlgmr.msra.gmra.mrb[12].mxu1 %vm1120_vm1, %v1253_v63 }
 0x370   : > { %1482 = vmatpush1.bf16.msra.mxu0 %v1893_v45  ;;  %1525 = vmatpush1.bf16.msra.mxu1 %v1895_v48 }
 0x371   : > { %1483 = vmatprep.subr.bf16.mxu0 %v1902_v0  ;;  %1526 = vmatprep.subr.bf16.mxu1 %v1904_v1 }
 0x372   : > { %1513 = vmatprep.mubr.bf16.mxu0 %v2305_v44  ;;  %1556 = vmatprep.mubr.bf16.mxu1 %v2305_v44  ;;  %v2707_v44 = vrot.slane %v1270_v8, %v1302_v28 }
 0x374   : > { %1484 = vmatpush1.bf16.msra.mxu0 %v1901_v2  ;;  %1527 = vmatpush1.bf16.msra.mxu1 %v1903_v3 }
 0x377   : > { %1907 = vmatmul.mubr.msk.bf16.vlgmr.msra.gmra.mrb[16].mxu0 %vm1120_vm1, %v1253_v63  ;;  %1908 = vmatmul.mubr.msk.bf16.vlgmr.msra.gmra.mrb[16].mxu1 %vm1120_vm1, %v1253_v63 }
 0x442   : > { %v1429_v15 = vpop.f32.mrb[12].mxu0  ;;  %v1472_v16 = vpop.f32.mrb[12].mxu1 }
 0x443   : > { %v1430_v17 = vadd.f32 %v1429_v15, %v1275_v11  ;;  %v1473_v18 = vadd.f32 %v1472_v16, %v1283_v12  ;;  %v1431_v19 = vpop.f32.mrb[13].mxu0  ;;  %v1474_v20 = vpop.f32.mrb[13].mxu1 }
 0x444   : > { %v1432_v23 = vadd.f32 %v1431_v19, %v1279_v13  ;;  %v1475_v24 = vadd.f32 %v1474_v20, %v1287_v14  ;;  %v1433_v25 = vpop.f32.mrb[14].mxu0  ;;  %v1476_v26 = vpop.f32.mrb[14].mxu1 }
 0x445   : > { %v1909_v29 = vmul.f32 -1.442695, %v1430_v17  ;;  %v1911_v30 = vmul.f32 -1.442695, %v1473_v18  ;;  %v1434_v31 = vadd.f32 %v1433_v25, %v1275_v11  ;;  %v1477_v32 = vadd.f32 %v1476_v26, %v1283_v12  ;;  %v1435_v33 = vpop.f32.mrb[15].mxu0  ;;  %v1478_v34 = vpop.f32.mrb[15].mxu1 }
 0x446   : > { %v1910_v35 = vmul.f32 -1.442695, %v1432_v23  ;;  %v1912_v36 = vmul.f32 -1.442695, %v1475_v24  ;;  %v1436_v37 = vadd.f32 %v1435_v33, %v1279_v13  ;;  %v1479_v38 = vadd.f32 %v1478_v34, %v1287_v14 }
 0x447   : > { %2173 = vpow2.f32 %v1909_v29  ;;  %v1917_v39 = vmul.f32 -1.442695, %v1434_v31  ;;  %v1919_v42 = vmul.f32 -1.442695, %v1477_v32 }
 0x448   : > { %2175 = vpow2.f32 %v1911_v30  ;;  %v1918_v45 = vmul.f32 -1.442695, %v1436_v37  ;;  %v1920_v46 = vmul.f32 -1.442695, %v1479_v38 }
 0x449   : > { %2177 = vpow2.f32 %v1910_v35 }
 0x44a   : > { %2179 = vpow2.f32 %v1912_v36  ;;  %v1515_v47 = vpop.f32.mrb[16].mxu0  ;;  %v1558_v48 = vpop.f32.mrb[16].mxu1 }
 0x44b   : > { %2181 = vpow2.f32 %v1917_v39  ;;  %v1516_v49 = vadd.f32 %v1515_v47, %v1291_v40  ;;  %v1559_v50 = vadd.f32 %v1558_v48, %v1299_v41  ;;  %v1517_v51 = vpop.f32.mrb[17].mxu0  ;;  %v1560_v52 = vpop.f32.mrb[17].mxu1 }
 0x44c   : > { %2183 = vpow2.f32 %v1919_v42  ;;  %v1518_v53 = vadd.f32 %v1517_v51, %v1295_v43  ;;  %v1561_v54 = vadd.f32 %v1560_v52, %v2707_v44  ;;  %v1519_v55 = vpop.f32.mrb[18].mxu0  ;;  %v1562_v56 = vpop.f32.mrb[18].mxu1 }
 0x44d   : > { %2185 = vpow2.f32 %v1918_v45  ;;  %v1913_v57 = vmul.f32 -1.442695, %v1516_v49  ;;  %v1915_v58 = vmul.f32 -1.442695, %v1559_v50  ;;  %v1520_v59 = vadd.f32 %v1519_v55, %v1291_v40  ;;  %v1521_v60 = vpop.f32.mrb[19].mxu0  ;;  %v1564_v61 = vpop.f32.mrb[19].mxu1 }
 0x44e   : > { %2187 = vpow2.f32 %v1920_v46  ;;  %v1914_v62 = vmul.f32 -1.442695, %v1518_v53  ;;  %v1916_v63 = vmul.f32 -1.442695, %v1561_v54  ;;  %v1563_v18 = vadd.f32 %v1562_v56, %v1299_v41 }
 0x44f   : > { %2189 = vpow2.f32 %v1913_v57  ;;  %v1921_v0 = vmul.f32 -1.442695, %v1520_v59  ;;  %v1522_v21 = vadd.f32 %v1521_v60, %v1295_v43  ;;  %v1565_v24 = vadd.f32 %v1564_v61, %v2707_v44 }
 0x450   : > { %2191 = vpow2.f32 %v1915_v58  ;;  %v1923_v29 = vmul.f32 -1.442695, %v1563_v18 }
 0x451   : > { %v2174_v1 = vpop.eup %2173  ;;  %2193 = vpow2.f32 %v1914_v62  ;;  %v1922_v31 = vmul.f32 -1.442695, %v1522_v21  ;;  %v1924_v33 = vmul.f32 -1.442695, %v1565_v24 }
 0x452   : > { %v2176_v2 = vpop.eup %2175  ;;  %v1615_v3 = vadd.f32 1.0, %v2174_v1  ;;  %2195 = vpow2.f32 %v1916_v63 }
 0x453   : > { %v2178_v4 = vpop.eup %2177  ;;  %v1617_v5 = vadd.f32 1.0, %v2176_v2  ;;  %2197 = vpow2.f32 %v1921_v0 }
 0x454   : > { %v2180_v6 = vpop.eup %2179  ;;  %2199 = vrcp.f32 %v1615_v3  ;;  %v1616_v7 = vadd.f32 1.0, %v2178_v4 }
 0x455   : > { %v2182_v8 = vpop.eup %2181  ;;  %2201 = vrcp.f32 %v1617_v5  ;;  %v1618_v9 = vadd.f32 1.0, %v2180_v6 }
 0x456   : > { %v2184_v10 = vpop.eup %2183  ;;  %2203 = vrcp.f32 %v1616_v7  ;;  %v1623_v11 = vadd.f32 1.0, %v2182_v8 }
 0x457   : > { %v2186_v12 = vpop.eup %2185  ;;  %2205 = vrcp.f32 %v1618_v9  ;;  %v1625_v13 = vadd.f32 1.0, %v2184_v10 }
 0x458   : > { %v2188_v14 = vpop.eup %2187  ;;  %2207 = vrcp.f32 %v1623_v11  ;;  %v1624_v15 = vadd.f32 1.0, %v2186_v12 }
 0x459   : > { %v2190_v16 = vpop.eup %2189  ;;  %2209 = vrcp.f32 %v1625_v13  ;;  %v1626_v17 = vadd.f32 1.0, %v2188_v14 }
 0x45a   : > { %v2192_v19 = vpop.eup %2191  ;;  %2211 = vrcp.f32 %v1624_v15  ;;  %v1619_v20 = vadd.f32 1.0, %v2190_v16 }
 0x45b   : > { %v2194_v22 = vpop.eup %2193  ;;  %2213 = vrcp.f32 %v1626_v17  ;;  %v1621_v23 = vadd.f32 1.0, %v2192_v19 }
 0x45c   : > { %v2196_v25 = vpop.eup %2195  ;;  %2215 = vrcp.f32 %v1619_v20  ;;  %v1620_v26 = vadd.f32 1.0, %v2194_v22 }
 0x45d   : > { %v2198_v27 = vpop.eup %2197  ;;  %2217 = vrcp.f32 %v1621_v23  ;;  %v1622_v28 = vadd.f32 1.0, %v2196_v25 }
 0x45e   : > { %v2200_v30 = vpop.eup %2199  ;;  %2219 = vrcp.f32 %v1620_v26  ;;  %v1627_v49 = vadd.f32 1.0, %v2198_v27 }
 0x45f   : > { %v2202_v32 = vpop.eup %2201  ;;  %2221 = vrcp.f32 %v1622_v28 }
 0x460   : > { %v2204_v34 = vpop.eup %2203  ;;  %2223 = vpow2.f32 %v1923_v29 }
 0x461   : > { %v2206_v35 = vpop.eup %2205  ;;  %v1940_v36 = vpack.c.bf16 %v2204_v34, %v2200_v30  ;;  %2225 = vpow2.f32 %v1922_v31 }
 0x462   : > { %v2208_v37 = vpop.eup %2207  ;;  %v1941_v38 = vpack.c.bf16 %v2206_v35, %v2202_v32  ;;  %2227 = vpow2.f32 %v1924_v33 }
 0x463   : > { %v2210_v39 = vpop.eup %2209  ;;  %1711 = vst [vmem:[%s2714_s30] sm:$0xff] %v1940_v36  ;;  %2229 = vrcp.f32 %v1627_v49 }
 0x464   : > { %v2212_v40 = vpop.eup %2211  ;;  %1712 = vst [vmem:[%s2714_s30 + $0x8] sm:$0xff] %v1941_v38 }
 0x465   : > { %v2214_v41 = vpop.eup %2213  ;;  %v1944_v42 = vpack.c.bf16 %v2212_v40, %v2208_v37 }
 0x466   : > { %v2216_v43 = vpop.eup %2215  ;;  %v1945_v44 = vpack.c.bf16 %v2214_v41, %v2210_v39 }
 0x467   : > { %v2218_v45 = vpop.eup %2217  ;;  %1715 = vst [vmem:[%s2714_s30 + $0x20] sm:$0xff] %v1944_v42 }
 0x468   : > { %v2220_v46 = vpop.eup %2219  ;;  %1716 = vst [vmem:[%s2714_s30 + $0x28] sm:$0xff] %v1945_v44 }
 0x469   : > { %v2222_v47 = vpop.eup %2221  ;;  %v1942_v48 = vpack.c.bf16 %v2220_v46, %v2216_v43 }
 0x46a   : > { %v1943_v50 = vpack.c.bf16 %v2222_v47, %v2218_v45  ;;  %v2224_v51 = vpop.eup %2223 }
 0x46b   : > { %1713 = vst [vmem:[%s2714_s30 + $0x10] sm:$0xff] %v1942_v48  ;;  %v2226_v52 = vpop.eup %2225  ;;  %v1629_v53 = vadd.f32 1.0, %v2224_v51 }
 0x46c   : > { %1714 = vst [vmem:[%s2714_s30 + $0x18] sm:$0xff] %v1943_v50  ;;  %v2228_v54 = vpop.eup %2227  ;;  %v1628_v55 = vadd.f32 1.0, %v2226_v52 }
 0x46d   : > { %2231 = vrcp.f32 %v1629_v53  ;;  %v1630_v56 = vadd.f32 1.0, %v2228_v54  ;;  %v2230_v57 = vpop.eup %2229 }
 0x46e   : > { %2233 = vrcp.f32 %v1628_v55 }
 0x46f   : > { %2235 = vrcp.f32 %v1630_v56 }
 0x477   : > { %v2232_v58 = vpop.eup %2231 }
 0x478   : > { %v2234_v59 = vpop.eup %2233 }
 0x479   : > { %v2236_v60 = vpop.eup %2235  ;;  %v1946_v61 = vpack.c.bf16 %v2234_v59, %v2230_v57 }
 0x47a   : > { %v1947_v62 = vpack.c.bf16 %v2236_v60, %v2232_v58 }
 0x47b   : > { %1717 = vst [vmem:[%s2714_s30 + $0x30] sm:$0xff] %v1946_v61 }
 0x47c   : > { %1718 = vst [vmem:[%s2714_s30 + $0x38] sm:$0xff] %v1947_v62 }
 0x47d   : > { %2250 = shalt.err (!%p2247_p3)
}
 0x47e   : > { %s2251_s25 = scalar_lea.hbm %s2727_s21, 1024  ;;  %s2255_s22 = scalar_lea.hbm %s2786_s10, 4096 }
 0x47f   : > { %p2252_p4 = scmp.ne.s32.totalorder %s2727_s21, %s2251_s25  ;;  %p2256_p9 = scmp.lt.u32.totalorder %s2727_s21, %s2786_s10 }
 0x480   : > { %p2257_p10 = scmp.lt.u32.totalorder %s2255_s22, %s2251_s25  ;;  %p2259_p12 = scmp.lt.u32.totalorder %s2251_s25, %s2727_s21 }
 0x481   : > { %p2253_p7 = pnand %p2252_p4, %p2402_p5 }
 0x482   : > { %p2258_p11 = por %p2257_p10, %p2256_p9 }
 0x483   : > { %p2254_p8 = pneg %p2253_p7 }
 0x484   : > { %p2260_p13 = por %p2259_p12, %p2258_p11 }
 0x486   : > { %p2261_p0 = pnand %p2260_p13, %p2254_p8 }
 0x488   : > { %2264 = shalt.err (!%p2261_p0)
}
 0x489   : > { %s2307_s18 = smov 512   ;;  %s2308_s20 = smov 32  }
 0x48a   : > { %2057 = dma.vmem_to_hbm [thread:$0]  (%p2402_p5), %s2729_s27, 1024, %s2727_s21, %s2735_s17, %s2307_s18, %s2307_s18, %s2308_s20  }
 0x48b PF: > { %p2063_p1 = scmp.ge.s32.totalorder %s2299_s16, 2  ;;  %s1749_s26 = sand.u32 1, %s2287_s13  }
 0x48c   : > { %s1750_s28 = scalar_lea.sflag [#allocation3], %s1749_s26 }
 0x48d   : > { %p2060_p2 = pnand %p2063_p1, %p2406_p6 }
 0x48f   : > { %2282 = dma.done.wait (!%p2060_p2), %s1750_s28, 1024  }
 0x490   : > { %2284 = vsyncadd (!%p2060_p2), %s1750_s28, 4294966272  ;;  %s2790_s25 = sld [smem:[#allocation5_spill]]  ;;  %p20_p3 = scmp.ge.s32.totalorder %s2389_s19, 6  }
 0x491   : > { %s2791_s13 = smov %s2291_s14  ;;  %s2792_s14 = smov %s2295_s15 }
 0x492   : > { %s2794_s16 = smov %s2389_s19  ;;  %22 = sbr.rel (!%p20_p3) target bundleno = 3 (0x3), region = 98 }
 0x496   : > { %s2793_s15 = smov %s2790_s25 }
 0x499   :  { %1755 = vsyncpa [#allocation3], 1 }
 0x49a   :  { %1757 = vsyncpa [#allocation3 + $0x1], 1 }

</bundles_post_ra>
